<compile_context>
chip_gen: v6e
topology: v6e:2x2x1
jax: 0.10.0
libtpu: 0.0.40
codegen_flags: <defaults>
</compile_context>

<pallas_src>
import jax
import jax.numpy as jnp
from jax.experimental import pallas as pl
from jax.experimental.pallas import tpu as pltpu

D_IN = 64        # input_dim used in the demo
D_H1 = 32        # fc1 out
D_H2 = 16        # fc2 out (feat)
D_OUT = 1        # fc3 out
D_FUSED = D_H2 + D_OUT   # fused fc2|fc3 output width (17)


def mlp_kernel(x_ref, w1_ref, b1_ref, w23_ref, b23_ref, out_ref, feat_ref):
    # fc1 -> relu (f32 accumulation; bias add + relu in f32 regardless of the
    # matmul input dtype). The cast happens in-kernel so the wrapper never
    # writes a converted copy of x back to HBM.
    x = x_ref[...].astype(w1_ref.dtype)
    h1 = jnp.dot(x, w1_ref[...], preferred_element_type=jnp.float32)
    h1 = jnp.maximum(h1 + b1_ref[...], 0.0)
    # TODO(synk): Dropout(p=0.6) is identity in eval mode; a training-mode
    # kernel would mask via pltpu.prng_seed / pltpu.prng_random_bits.

    # Fused fc2|fc3 (two linears with no nonlinearity in between):
    # columns [:16] == feat, column [16] == fc3 logits.
    h1 = h1.astype(w23_ref.dtype)
    y = jnp.dot(h1, w23_ref[...], preferred_element_type=jnp.float32)
    y = y + b23_ref[...]

    feat_ref[...] = y[:, :D_H2].astype(feat_ref.dtype)
    logits = y[:, D_H2:]                                  # (tm, 1)
    out_ref[...] = (1.0 / (1.0 + jnp.exp(-logits))).astype(out_ref.dtype)


def _round_up(v, m):
    return ((v + m - 1) // m) * m


def _choose_tm(n, tm_max):
    """Row-tile size.

    Large tiles amortize the ~0.35us fixed per-grid-step overhead (the kernel
    is purely HBM-read-bound on x); for large bags keep >= 8 grid steps so the
    'parallel' grid axis can shard across both TensorCores on v7x.
    """
    if n <= tm_max:
        return _round_up(max(n, 8), 8)          # single step covers the bag
    return min(tm_max, max(512, _round_up(pl.cdiv(n, 8), 128)))


def network_forward(x, params, *, tm_max=4096, compute_dtype=None):
    """Pallas forward of `network` (eval mode).

    Returns (sigmoid(fc3(x)), feat) as (n, 1) and (n, 16) f32 arrays, i.e. the
    PyTorch module's output layout, with no wrapper-side transposes/pads.
    If `x` is supplied in bf16 (and compute_dtype is bf16) the dominant HBM
    read stream is halved on v6e/v7x.
    """
    w1, b1, w2, b2, w3, b3 = params
    n, d_in = x.shape
    assert d_in == w1.shape[0]

    if compute_dtype is None:
        compute_dtype = x.dtype

    # Fold fc3 into fc2 in f32, then cast. Note: in the bf16 path w2@w3 is
    # quantized to bf16 *after* the fold (slightly different op order than the
    # reference, covered by the loose bf16 tolerance).
    w23 = jnp.concatenate([w2, w2 @ w3], axis=1).astype(compute_dtype)      # (32, 17)
    b23 = jnp.concatenate([b2, b2 @ w3 + b3], axis=1).astype(jnp.float32)   # (1, 17)
    w1_c = w1.astype(compute_dtype)
    b1_f = b1.astype(jnp.float32)

    tm = _choose_tm(n, tm_max)
    # Ragged tail block is masked by Pallas: OOB input rows may read garbage,
    # but every op is row-wise so valid rows are unaffected and OOB output
    # rows are dropped. No jnp.pad pass over x.
    grid = (pl.cdiv(n, tm),)

    out_shapes = (
        jax.ShapeDtypeStruct((n, D_OUT), jnp.float32),   # sigmoid(fc3)
        jax.ShapeDtypeStruct((n, D_H2), jnp.float32),    # feat
    )

    out, feat = pl.pallas_call(
        mlp_kernel,
        out_shape=out_shapes,
        grid_spec=pltpu.PrefetchScalarGridSpec(
            num_scalar_prefetch=0,
            grid=grid,
            in_specs=[
                pl.BlockSpec((tm, d_in), lambda i: (i, 0)),        # x row tile
                pl.BlockSpec((d_in, D_H1), lambda i: (0, 0)),      # w1
                pl.BlockSpec((1, D_H1), lambda i: (0, 0)),         # b1
                pl.BlockSpec((D_H1, D_FUSED), lambda i: (0, 0)),   # w2 | w2@w3
                pl.BlockSpec((1, D_FUSED), lambda i: (0, 0)),      # b2 | b2@w3+b3
            ],
            out_specs=[
                pl.BlockSpec((tm, D_OUT), lambda i: (i, 0)),
                pl.BlockSpec((tm, D_H2), lambda i: (i, 0)),
            ],
        ),
        compiler_params=pltpu.CompilerParams(
            dimension_semantics=("parallel",),
            # Large tiles + double-buffered, lane-padded output buffers can
            # exceed the default scoped VMEM limit (16 MiB on v5e); 48 MiB is
            # comfortably within physical VMEM on v5e/v6e (128 MiB) and v7x
            # (64 MiB) while leaving headroom.
            vmem_limit_bytes=48 * 1024 * 1024,
        ),
    )(x, w1_c, b1_f, w23, b23)

    return out, feat


def init_params(key, d_in):
    """Deterministic nn.Linear-style init; weights stored as (in, out)."""
    ks = jax.random.split(key, 6)

    def lin(kw, kb, fan_in, fan_out):
        bound = 1.0 / jnp.sqrt(fan_in)
        w = jax.random.uniform(kw, (fan_in, fan_out), jnp.float32, -bound, bound)
        b = jax.random.uniform(kb, (1, fan_out), jnp.float32, -bound, bound)
        return w, b

    w1, b1 = lin(ks[0], ks[1], d_in, D_H1)
    w2, b2 = lin(ks[2], ks[3], D_H1, D_H2)
    w3, b3 = lin(ks[4], ks[5], D_H2, D_OUT)
    return (w1, b1, w2, b2, w3, b3)


def reference_forward(x, params):
    w1, b1, w2, b2, w3, b3 = params
    h1 = jnp.maximum(x @ w1 + b1, 0.0)
    feat = h1 @ w2 + b2
    out = jax.nn.sigmoid(feat @ w3 + b3)
    return out, feat


if __name__ == "__main__":
    key = jax.random.PRNGKey(0)
    kx, kp = jax.random.split(key)

    # Small bag, single grid step (matches the MIL demo use-case).
    n = 16
    x = jax.random.normal(kx, (n, D_IN), dtype=jnp.float32)
    params = init_params(kp, D_IN)

    ref_out, ref_feat = reference_forward(x, params)

    out, feat = network_forward(x, params)
    out, feat = jax.block_until_ready((out, feat))
    assert out.shape == (n, 1) and feat.shape == (n, D_H2)
    assert jnp.allclose(feat, ref_feat, atol=1e-5, rtol=1e-5)
    assert jnp.allclose(out, ref_out, atol=1e-5, rtol=1e-5)

    # bf16-upstream path: x already bf16, so the kernel reads half the bytes
    # and there is no wrapper-side astype pass over x.
    out_bf, feat_bf = network_forward(
        x.astype(jnp.bfloat16), params, compute_dtype=jnp.bfloat16)
    out_bf, feat_bf = jax.block_until_ready((out_bf, feat_bf))
    assert jnp.allclose(feat_bf, ref_feat, atol=1e-1, rtol=1e-1)
    assert jnp.allclose(out_bf, ref_out, atol=1e-1, rtol=1e-1)

    # Multi-step grid with a ragged tail (n not a multiple of tm), small tiles
    # forced via tm_max to exercise the pipelined/megacore path at small size.
    n2 = 1000
    x2 = jax.random.normal(kx, (n2, D_IN), dtype=jnp.float32)
    ref_out2, ref_feat2 = reference_forward(x2, params)
    out2, feat2 = network_forward(x2, params, tm_max=128)
    out2, feat2 = jax.block_until_ready((out2, feat2))
    assert out2.shape == (n2, 1) and feat2.shape == (n2, D_H2)
    assert jnp.allclose(feat2, ref_feat2, atol=1e-4, rtol=1e-4)
    assert jnp.allclose(out2, ref_out2, atol=1e-4, rtol=1e-4)

    print("KERNEL_OK")
</pallas_src>

<mosaic_0001>
module attributes {stable_mosaic.version = 11 : i64} {
  func.func @mlp_kernel(%arg0: i32, %arg1: memref<16x64xf32, #tpu.memory_space<vmem>>, %arg2: memref<64x32xf32, #tpu.memory_space<vmem>>, %arg3: memref<1x32xf32, #tpu.memory_space<vmem>>, %arg4: memref<32x17xf32, #tpu.memory_space<vmem>>, %arg5: memref<1x17xf32, #tpu.memory_space<vmem>>, %arg6: memref<16x1xf32, #tpu.memory_space<vmem>>, %arg7: memref<16x16xf32, #tpu.memory_space<vmem>>) attributes {dimension_semantics = [#tpu.dimension_semantics<parallel>], iteration_bounds = array<i64: 1>, scalar_prefetch = 0 : i64, scratch_operands = 0 : i64, tpu.core_type = #tpu.core_type<tc>, window_params = [{transform_indices = @transform_0, window_bounds = array<i64: 16, 64>}, {pipeline_mode = #tpu.pipeline_mode<synchronous>, transform_indices = @transform_1, window_bounds = array<i64: 64, 32>}, {pipeline_mode = #tpu.pipeline_mode<synchronous>, transform_indices = @transform_2, window_bounds = array<i64: 1, 32>}, {pipeline_mode = #tpu.pipeline_mode<synchronous>, transform_indices = @transform_3, window_bounds = array<i64: 32, 17>}, {pipeline_mode = #tpu.pipeline_mode<synchronous>, transform_indices = @transform_4, window_bounds = array<i64: 1, 17>}, {transform_indices = @transform_5, window_bounds = array<i64: 16, 1>}, {transform_indices = @transform_6, window_bounds = array<i64: 16, 16>}]} {
    %c0 = arith.constant 0 : index
    %c0_0 = arith.constant 0 : index
    %0 = vector.load %arg1[%c0, %c0_0] : memref<16x64xf32, #tpu.memory_space<vmem>>, vector<16x64xf32>
    %c0_1 = arith.constant 0 : index
    %c0_2 = arith.constant 0 : index
    %1 = vector.load %arg2[%c0_1, %c0_2] : memref<64x32xf32, #tpu.memory_space<vmem>>, vector<64x32xf32>
    %cst = arith.constant dense<0.000000e+00> : vector<16x32xf32>
    %2 = tpu.matmul %0, %1, %cst {dimension_numbers = #tpu.dot_dimension_numbers<[1], [0], [0], [1], [0, 0, 1, 1], [], []>} : vector<16x64xf32>, vector<64x32xf32>, vector<16x32xf32> -> vector<16x32xf32>
    %c0_3 = arith.constant 0 : index
    %c0_4 = arith.constant 0 : index
    %3 = vector.load %arg3[%c0_3, %c0_4] : memref<1x32xf32, #tpu.memory_space<vmem>>, vector<1x32xf32>
    %4 = vector.broadcast %3 : vector<1x32xf32> to vector<16x32xf32>
    %5 = arith.addf %2, %4 : vector<16x32xf32>
    %cst_5 = arith.constant 0.000000e+00 : f32
    %6 = vector.broadcast %cst_5 : f32 to vector<16x32xf32>
    %7 = arith.maximumf %5, %6 : vector<16x32xf32>
    %c0_6 = arith.constant 0 : index
    %c0_7 = arith.constant 0 : index
    %8 = vector.load %arg4[%c0_6, %c0_7] : memref<32x17xf32, #tpu.memory_space<vmem>>, vector<32x17xf32>
    %cst_8 = arith.constant dense<0.000000e+00> : vector<16x17xf32>
    %9 = tpu.matmul %7, %8, %cst_8 {dimension_numbers = #tpu.dot_dimension_numbers<[1], [0], [0], [1], [0, 0, 1, 1], [], []>} : vector<16x32xf32>, vector<32x17xf32>, vector<16x17xf32> -> vector<16x17xf32>
    %c0_9 = arith.constant 0 : index
    %c0_10 = arith.constant 0 : index
    %10 = vector.load %arg5[%c0_9, %c0_10] : memref<1x17xf32, #tpu.memory_space<vmem>>, vector<1x17xf32>
    %11 = vector.broadcast %10 : vector<1x17xf32> to vector<16x17xf32>
    %12 = arith.addf %9, %11 : vector<16x17xf32>
    %13 = vector.extract_strided_slice %12 {offsets = [0, 0], sizes = [16, 16], strides = [1, 1]} : vector<16x17xf32> to vector<16x16xf32>
    %c0_11 = arith.constant 0 : index
    %c0_12 = arith.constant 0 : index
    %14 = vector.load %arg7[%c0_11, %c0_12] : memref<16x16xf32, #tpu.memory_space<vmem>>, vector<16x16xf32>
    tpu.vector_store %arg7[%c0_11, %c0_12], %13 {strides = array<i32>} : memref<16x16xf32, #tpu.memory_space<vmem>>, vector<16x16xf32>,
    %15 = vector.extract_strided_slice %12 {offsets = [0, 16], sizes = [16, 1], strides = [1, 1]} : vector<16x17xf32> to vector<16x1xf32>
    %cst_13 = arith.constant 0.000000e+00 : f32
    %16 = vector.broadcast %cst_13 : f32 to vector<16x1xf32>
    %17 = arith.subf %16, %15 : vector<16x1xf32>
    %18 = math.exp %17 : vector<16x1xf32>
    %cst_14 = arith.constant 1.000000e+00 : f32
    %19 = vector.broadcast %cst_14 : f32 to vector<16x1xf32>
    %20 = arith.addf %19, %18 : vector<16x1xf32>
    %cst_15 = arith.constant 1.000000e+00 : f32
    %21 = vector.broadcast %cst_15 : f32 to vector<16x1xf32>
    %22 = arith.divf %21, %20 : vector<16x1xf32>
    %c0_16 = arith.constant 0 : index
    %c0_17 = arith.constant 0 : index
    %23 = vector.load %arg6[%c0_16, %c0_17] : memref<16x1xf32, #tpu.memory_space<vmem>>, vector<16x1xf32>
    tpu.vector_store %arg6[%c0_16, %c0_17], %22 {strides = array<i32>} : memref<16x1xf32, #tpu.memory_space<vmem>>, vector<16x1xf32>,
    return
  }
  func.func @transform_0(%arg0: i32) -> (i32, i32) {
    %c0_i32 = arith.constant 0 : i32
    %c0_i32_0 = arith.constant 0 : i32
    return %arg0, %c0_i32 : i32, i32
  }
  func.func @transform_1(%arg0: i32) -> (i32, i32) {
    %c0_i32 = arith.constant 0 : i32
    %c0_i32_0 = arith.constant 0 : i32
    %c0_i32_1 = arith.constant 0 : i32
    return %c0_i32, %c0_i32_0 : i32, i32
  }
  func.func @transform_2(%arg0: i32) -> (i32, i32) {
    %c0_i32 = arith.constant 0 : i32
    %c0_i32_0 = arith.constant 0 : i32
    %c0_i32_1 = arith.constant 0 : i32
    return %c0_i32, %c0_i32_0 : i32, i32
  }
  func.func @transform_3(%arg0: i32) -> (i32, i32) {
    %c0_i32 = arith.constant 0 : i32
    %c0_i32_0 = arith.constant 0 : i32
    %c0_i32_1 = arith.constant 0 : i32
    return %c0_i32, %c0_i32_0 : i32, i32
  }
  func.func @transform_4(%arg0: i32) -> (i32, i32) {
    %c0_i32 = arith.constant 0 : i32
    %c0_i32_0 = arith.constant 0 : i32
    %c0_i32_1 = arith.constant 0 : i32
    return %c0_i32, %c0_i32_0 : i32, i32
  }
  func.func @transform_5(%arg0: i32) -> (i32, i32) {
    %c0_i32 = arith.constant 0 : i32
    %c0_i32_0 = arith.constant 0 : i32
    return %arg0, %c0_i32 : i32, i32
  }
  func.func @transform_6(%arg0: i32) -> (i32, i32) {
    %c0_i32 = arith.constant 0 : i32
    %c0_i32_0 = arith.constant 0 : i32
    return %arg0, %c0_i32 : i32, i32
  }
}

</mosaic_0001>

<bundles_post_ra>
// kernel: tpu_custom_call.1
= control target key start
LH: loop header
LB: loop body
LE: loop exit
PB: predicated region body
PF: predicated region fallthrough
CT: control target
= control target key end

     0   :  { %vm40_vm0 = vcmask 523264   ;;  %s447_s0 = inlined_call_operand.vmem [shape: f32[16,64], index: 0, kind: input, shape index: {}]   ;;  %s448_s1 = inlined_call_operand.vmem [shape: f32[64,32], index: 1, kind: input, shape index: {}]   ;;  %s449_s2 = inlined_call_operand.vmem [shape: f32[1,32], index: 2, kind: input, shape index: {}]   ;;  %s450_s3 = inlined_call_operand.vmem [shape: f32[32,17], index: 3, kind: input, shape index: {}]   ;;  %s451_s4 = inlined_call_operand.vmem [shape: f32[1,17], index: 4, kind: input, shape index: {}]   ;;  %s452_s5 = inlined_call_operand.vmem [shape: f32[16,1], index: 5, kind: output, shape index: {0}]   ;;  %s453_s6 = inlined_call_operand.hbm [shape: f32[16,16], index: 6, kind: output, shape index: {1}]  }
   0x1   :  { %v32_v0 = vld [vmem:[%s448_s1 + $0x38] sm:$0xff]  ;;  %v31_v1 = vld [vmem:[%s448_s1 + $0x30] sm:$0xff]  ;;  %v30_v2 = vld [vmem:[%s448_s1 + $0x28] sm:$0xff] }
   0x2   :  { %285 = vmatprep.subr.mxu0 %v32_v0  ;;  %v23_v3 = vld [vmem:[%s447_s0] sm:$0xff] }
   0x3   :  { %286 = vmatpush3.msra.mxu0 %v32_v0  ;;  %301 = vmatprep.mubr.msk.f32.mxu0 %vm40_vm0, %v23_v3 }
   0x4   :  { %287 = vmatprep.subr.mxu0 %v31_v1 }
   0x5   :  { %12 = vsyncpa [#allocation3], 0  ;;  %288 = vmatpush3.msra.mxu0 %v31_v1  ;;  %v29_v4 = vld [vmem:[%s448_s1 + $0x20] sm:$0xff]  ;;  %v28_v5 = vld [vmem:[%s448_s1 + $0x18] sm:$0xff]  ;;  %vm135_vm1 = vcmask 261120   ;;  %vm217_vm2 = vcmask 130048  }
   0x6   :  { %289 = vmatprep.subr.mxu0 %v30_v2  ;;  %v27_v6 = vld [vmem:[%s448_s1 + $0x10] sm:$0xff]  ;;  %v26_v7 = vld [vmem:[%s448_s1 + $0x8] sm:$0xff]  ;;  %v25_v8 = vld [vmem:[%s448_s1] sm:$0xff] }
   0x7   :  { %290 = vmatpush3.msra.mxu0 %v30_v2  ;;  %v24_v9 = vld [vmem:[%s447_s0 + $0x8] sm:$0xff]  ;;  %v127_v10 = vld [vmem:[%s450_s3 + $0x18] sm:$0xff]  ;;  %v126_v11 = vld [vmem:[%s450_s3 + $0x10] sm:$0xff] }
   0x8   :  { %291 = vmatprep.subr.mxu0 %v29_v4  ;;  %304 = vmatprep.subr.mxu1 %v127_v10  ;;  %v125_v12 = vld [vmem:[%s450_s3 + $0x8] sm:$0xff]  ;;  %v124_v13 = vld [vmem:[%s450_s3] sm:$0xff] }
   0x9   :  { %292 = vmatpush3.msra.mxu0 %v29_v4  ;;  %305 = vmatpush3.msra.mxu1 %v127_v10  ;;  %v263_v14 = vld [vmem:[%s449_s2] ss:$0 sm:$0xff]  ;;  %s349_s2 = smov [#allocation2]  }
   0xa   :  { %293 = vmatprep.subr.mxu0 %v28_v5  ;;  %306 = vmatprep.subr.mxu1 %v126_v11  ;;  %v266_v21 = vld [vmem:[%s451_s4] ss:$0 sm:$0xff]  ;;  %s250_s3 = sshll.u32 %s349_s2, 4  ;;  %s251_s3 = int_to_ptr.vmem [resolvable:$true] %s250_s3 }
   0xb   :  { %294 = vmatpush3.msra.mxu0 %v28_v5  ;;  %307 = vmatpush3.msra.mxu1 %v126_v11  ;;  %s327_s4 = scalar_lea.vmem %s251_s3, 256  ;;  %p332_p1 = scmp.lt.s32.totalorder %s251_s3, %s251_s3 }
   0xc   :  { %295 = vmatprep.subr.mxu0 %v27_v6  ;;  %308 = vmatprep.subr.mxu1 %v125_v12  ;;  %p328_p0 = scmp.ne.s32.totalorder %s251_s3, %s327_s4  ;;  %p333_p2 = scmp.lt.s32.totalorder %s327_s4, %s327_s4 }
   0xd   :  { %296 = vmatpush3.msra.mxu0 %v27_v6  ;;  %309 = vmatpush3.msra.mxu1 %v125_v12 }
   0xe   :  { %297 = vmatprep.subr.mxu0 %v26_v7  ;;  %310 = vmatprep.subr.mxu1 %v124_v13  ;;  %p334_p3 = por %p333_p2, %p332_p1 }
   0xf   :  { %298 = vmatpush3.msra.mxu0 %v26_v7  ;;  %311 = vmatpush3.msra.mxu1 %v124_v13 }
  0x10   :  { %299 = vmatprep.subr.mxu0 %v25_v8  ;;  %p335_p4 = pnand %p334_p3, %p328_p0 }
  0x11   :  { %300 = vmatpush3.msra.mxu0 %v25_v8 }
  0x12   :  { %302 = vmatmul.mubr.msk.f32.vlgmr.msra.gmra.mxu0 %vm40_vm0, %v24_v9 }
  0xd2   :  { %v303_v15 = vpop.f32.mrf.mxu0 }
  0xd3   :  { %v119_v16 = vadd.f32 %v303_v15, %v263_v14 }
  0xd4   :  { %v113_v17 = vpop.f32.mrf.mxu0 }
  0xd5   :  { %v114_v18 = vadd.f32 %v263_v14, %v113_v17  ;;  %v123_v20 = vmax.f32 %v119_v16, 0.0 }
  0xd7   :  { %v122_v19 = vmax.f32 %v114_v18, 0.0 }
  0xd9   :  { %312 = vmatprep.mubr.msk.f32.mxu1 %vm135_vm1, %v122_v19 }
  0xda   :  { %313 = vmatmul.mubr.msk.f32.vlgmr.msra.gmra.mxu1 %vm135_vm1, %v123_v20 }
 0x19a   :  { %v314_v22 = vpop.f32.mrf.mxu1 }
 0x19b   :  { %v214_v23 = vadd.f32 %v314_v22, %v266_v21 }
 0x19c   :  { %v208_v24 = vpop.f32.mrf.mxu1 }
 0x19d   :  { %219 = vst.msk [vmem:[#allocation2 + $0x8] sm:$0xff] %vm217_vm2, %v214_v23  ;;  %v221_v25 = vsub.f32 0.0, %v214_v23  ;;  %v209_v26 = vadd.f32 %v266_v21, %v208_v24 }
 0x19f   :  { %v224_v27 = vmul.f32 1.442695, %v221_v25  ;;  %218 = vst.msk [vmem:[#allocation2] sm:$0xff] %vm217_vm2, %v209_v26  ;;  %v220_v28 = vsub.f32 0.0, %v209_v26 }
 0x1a1   :  { %v222_v29 = vmul.f32 1.442695, %v220_v28  ;;  %319 = vpow2.f32 %v224_v27 }
 0x1a3   :  { %321 = vpow2.f32 %v222_v29 }
 0x1ae   :  { %v320_v30 = vpop.eup %319 }
 0x1af   :  { %v227_v33 = vadd.f32 1.0, %v320_v30 }
 0x1b0   :  { %v322_v31 = vpop.eup %321 }
 0x1b1   :  { %v226_v32 = vadd.f32 1.0, %v322_v31 }
 0x1b3   :  { %323 = vrcp.f32 %v226_v32 }
 0x1b4   :  { %325 = vrcp.f32 %v227_v33 }
 0x1b5   :  { %338 = shalt.err (!%p335_p4)
}
 0x1b6   :  { %s350_s27 = smov 128   ;;  %s351_s28 = smov 8   ;;  %vm240_vm3 = vcmask 7168  }
 0x1b7   :  { %256 = dma.vmem_to_hbm [thread:$0]  %s251_s3, 256, %s453_s6, [#allocation3], %s350_s27, %s350_s27, %s351_s28  }
 0x1b8   :  { %s352_s7 = smov 112  }
 0x1c0   :  { %v324_v34 = vpop.eup %323 }
 0x1c1   :  { %234 = vrot.lane.b32.xlu0 %v324_v34, %s352_s7  ;;  %v326_v35 = vpop.eup %325 }
 0x1c5   :  { %236 = vrot.lane.b32.xlu0 %v326_v35, %s352_s7 }
 0x233   :  { %v235_v36 = vpop.permute.xlu0 %234 }
 0x234   :  { %241 = vst.msk [vmem:[%s452_s5] sm:$0xff] %vm240_vm3, %v235_v36 }
 0x237   :  { %v237_v37 = vpop.permute.xlu0 %236 }
 0x238   :  { %242 = vst.msk [vmem:[%s452_s5 + $0x8] sm:$0xff] %vm240_vm3, %v237_v37 }
 0x239   :  { %347 = dma.done.wait [#allocation3], 256  }
 0x23a   :  { %348 = vsyncadd [#allocation3], 4294967040 }
 0x23b   :  { %262 = vsyncpa [#allocation3], 1 }

</bundles_post_ra>
